<compile_context>
chip_gen: v7x
topology: tpu7x:2x2x1
jax: 0.10.0
libtpu: 0.0.40
codegen_flags: <defaults>
</compile_context>

<pallas_src>
import math
from functools import partial

import jax
import jax.numpy as jnp
from jax.experimental import pallas as pl
from jax.experimental.pallas import tpu as pltpu


_INV_SQRT2 = 1.0 / math.sqrt(2.0)
_LANE = 128       # vreg lane width -> feature dims padded to this
_SUBLANE16 = 16   # bf16 packs 16 rows per sublane group -> batch-tile multiple


def _gelu_exact(x):
    # nn.GELU() default is the exact (erf-based) GELU; evaluated in f32.
    # TODO(synk): tanh-approx GELU would route the transcendental through the EUP and
    # shrink the VALU epilogue, but changes numerics vs the PyTorch module, so keep erf.
    return 0.5 * x * (1.0 + jax.lax.erf(x * _INV_SQRT2))


def mlp_kernel(x_ref, w_in_ref, b_in_ref, w_h_ref, b_h_ref, w_out_ref, b_out_ref,
               o_ref, *, hidden_size):
    # input layer: Linear (bf16 operands, f32 MXU accumulate) + GELU (f32)
    h32 = jnp.dot(x_ref[...], w_in_ref[...], preferred_element_type=jnp.float32)
    h32 = _gelu_exact(h32 + b_in_ref[...])
    # hidden layers: (Linear + GELU) x hidden_size (static unroll; hidden_size is small)
    for l in range(hidden_size):
        h = h32.astype(w_h_ref.dtype)                   # bf16 only for the dot
        h32 = jnp.dot(h, w_h_ref[l], preferred_element_type=jnp.float32)
        h32 = _gelu_exact(h32 + b_h_ref[l:l + 1, :])    # (1, H) sublane broadcast
    # output layer: Linear (no activation), lane-dense (padded-O) store
    out = jnp.dot(h32.astype(w_out_ref.dtype), w_out_ref[...],
                  preferred_element_type=jnp.float32) + b_out_ref[...]
    o_ref[...] = out.astype(o_ref.dtype)


def _pad_dim(a, axis, target):
    pad = target - a.shape[axis]
    if pad == 0:
        return a
    cfg = [(0, 0)] * a.ndim
    cfg[axis] = (0, pad)
    return jnp.pad(a, cfg)


def mlp_pallas(x, w_in, b_in, w_h, b_h, w_out, b_out, *, tb=256):
    B, input_dim = x.shape
    hidden_size, hidden_dim, _ = w_h.shape
    output_dim = w_out.shape[-1]
    out_dtype = x.dtype

    # ---- lane-dense feature padding (exact-zero padding; numerics unchanged) ----
    Ip = pl.cdiv(input_dim, _LANE) * _LANE
    Hp = pl.cdiv(hidden_dim, _LANE) * _LANE
    Op = pl.cdiv(output_dim, _LANE) * _LANE

    b_in = jnp.asarray(b_in).reshape(1, hidden_dim)
    b_h = jnp.asarray(b_h).reshape(hidden_size, hidden_dim)
    b_out = jnp.asarray(b_out).reshape(1, output_dim)

    xb = _pad_dim(x, 1, Ip).astype(jnp.bfloat16)
    w_in_b = _pad_dim(_pad_dim(w_in, 0, Ip), 1, Hp).astype(jnp.bfloat16)
    w_h_b = _pad_dim(_pad_dim(w_h, 1, Hp), 2, Hp).astype(jnp.bfloat16)
    w_out_b = _pad_dim(_pad_dim(w_out, 0, Hp), 1, Op).astype(jnp.bfloat16)
    b_in_f = _pad_dim(b_in, 1, Hp).astype(jnp.float32)
    b_h_f = _pad_dim(b_h, 1, Hp).astype(jnp.float32)
    b_out_f = _pad_dim(b_out, 1, Op).astype(jnp.float32)

    # ---- batch tile: multiple of 16 (bf16 packing), capped at 256 (vreg pressure of
    #      the (tb, Hp) f32 activation), and shrunk so the grid has >=2 steps whenever
    #      the batch allows it (v7x megacore: "parallel" axis shards across 2 TCs). ----
    tb = max(_SUBLANE16, (int(tb) // _SUBLANE16) * _SUBLANE16)
    tb = min(tb, 256)
    if B > _SUBLANE16:
        half = pl.cdiv(pl.cdiv(B, 2), _SUBLANE16) * _SUBLANE16
        tb = min(tb, half)
    b_pad = pl.cdiv(B, tb) * tb
    if b_pad != B:
        xb = jnp.pad(xb, ((0, b_pad - B), (0, 0)))
    grid = (b_pad // tb,)

    kernel = partial(mlp_kernel, hidden_size=hidden_size)

    # ---- VMEM budget: resident padded weights/biases + double-buffered x/out tiles +
    #      f32 hidden activation, 4x headroom, clamped to ~75% of physical VMEM. ----
    weight_bytes = (w_in_b.size + w_h_b.size + w_out_b.size) * 2 \
        + (b_in_f.size + b_h_f.size + b_out_f.size) * 4
    act_bytes = 2 * (tb * Ip * 2 + tb * Op * out_dtype.itemsize) + tb * Hp * 4
    try:
        vmem_cap = int(pltpu.get_tpu_info().vmem_capacity_bytes)
    except Exception:
        vmem_cap = 64 << 20  # conservative fallback (v7x per-TC VMEM)
    vmem_bytes = int(min(max(4 * (weight_bytes + act_bytes), 4 << 20),
                         (vmem_cap * 3) // 4))

    out = pl.pallas_call(
        kernel,
        out_shape=jax.ShapeDtypeStruct((b_pad, Op), out_dtype),
        grid_spec=pl.GridSpec(
            grid=grid,
            in_specs=[
                # activations walk the batch dim
                pl.BlockSpec((tb, Ip), lambda i: (i, 0)),
                # weights / biases: full-array blocks, VMEM-resident across the grid
                pl.BlockSpec(w_in_b.shape, lambda i: (0, 0)),
                pl.BlockSpec(b_in_f.shape, lambda i: (0, 0)),
                pl.BlockSpec(w_h_b.shape, lambda i: (0, 0, 0)),
                pl.BlockSpec(b_h_f.shape, lambda i: (0, 0)),
                pl.BlockSpec(w_out_b.shape, lambda i: (0, 0)),
                pl.BlockSpec(b_out_f.shape, lambda i: (0, 0)),
            ],
            out_specs=pl.BlockSpec((tb, Op), lambda i: (i, 0)),
        ),
        compiler_params=pltpu.CompilerParams(
            dimension_semantics=("parallel",),
            vmem_limit_bytes=vmem_bytes,
        ),
    )(xb, w_in_b, b_in_f, w_h_b, b_h_f, w_out_b, b_out_f)

    return out[:B, :output_dim]


def mlp_reference_bf16(x, w_in, b_in, w_h, b_h, w_out, b_out):
    # Mimics the kernel numerics exactly: bf16 dot operands, f32 accumulation/elementwise.
    h = jnp.dot(x.astype(jnp.bfloat16), w_in.astype(jnp.bfloat16),
                preferred_element_type=jnp.float32)
    h = _gelu_exact(h + b_in.astype(jnp.float32))
    for l in range(w_h.shape[0]):
        h = jnp.dot(h.astype(jnp.bfloat16), w_h[l].astype(jnp.bfloat16),
                    preferred_element_type=jnp.float32)
        h = _gelu_exact(h + b_h[l].astype(jnp.float32))
    return jnp.dot(h.astype(jnp.bfloat16), w_out.astype(jnp.bfloat16),
                   preferred_element_type=jnp.float32) + b_out.astype(jnp.float32)


def mlp_reference_f32(x, w_in, b_in, w_h, b_h, w_out, b_out):
    h = _gelu_exact(x @ w_in + b_in)
    for l in range(w_h.shape[0]):
        h = _gelu_exact(h @ w_h[l] + b_h[l])
    return h @ w_out + b_out


if __name__ == "__main__":
    # Small shapes consistent with the module's forward pass.
    batch = 64
    input_dim = 16
    hidden_dim = 32
    output_dim = 4
    hidden_size = 3  # number of hidden (Linear+GELU) layers

    key = jax.random.PRNGKey(0)
    ks = jax.random.split(key, 8)

    # Deterministic synthetic parameters (Kaiming-uniform-like scale).
    def uinit(k, shape, fan_in):
        bound = 1.0 / math.sqrt(fan_in)
        return jax.random.uniform(k, shape, jnp.float32, -bound, bound)

    x = jax.random.normal(ks[0], (batch, input_dim), jnp.float32)

    w_in = uinit(ks[1], (input_dim, hidden_dim), input_dim)
    b_in = uinit(ks[2], (1, hidden_dim), input_dim)
    w_h = uinit(ks[3], (hidden_size, hidden_dim, hidden_dim), hidden_dim)
    b_h = uinit(ks[4], (hidden_size, hidden_dim), hidden_dim)
    w_out = uinit(ks[5], (hidden_dim, output_dim), hidden_dim)
    b_out = uinit(ks[6], (1, output_dim), hidden_dim)

    # With B=64 the wrapper picks tb=32 -> grid=(2,), so the batch-parallel pipeline
    # (and v7x megacore split) is actually exercised.
    out = mlp_pallas(x, w_in, b_in, w_h, b_h, w_out, b_out)
    out = jax.block_until_ready(out)

    ref_bf16 = mlp_reference_bf16(x, w_in, b_in, w_h, b_h, w_out, b_out)
    ref_f32 = mlp_reference_f32(x, w_in, b_in, w_h, b_h, w_out, b_out)

    assert out.shape == (batch, output_dim)
    # Tight check vs a reference with identical bf16/f32 numerics (zero padding is exact).
    assert jnp.allclose(out, ref_bf16, atol=1e-4, rtol=1e-4), "mismatch vs bf16 reference"
    # Loose sanity check vs the pure-f32 module semantics.
    assert jnp.allclose(out, ref_f32, atol=5e-2, rtol=5e-2), "mismatch vs f32 reference"

    print("KERNEL_OK")
</pallas_src>

<mosaic_0001>
module attributes {stable_mosaic.version = 11 : i64} {
  func.func @mlp_kernel(%arg0: i32, %arg1: memref<32x128xbf16, #tpu.memory_space<vmem>>, %arg2: memref<128x128xbf16, #tpu.memory_space<vmem>>, %arg3: memref<1x128xf32, #tpu.memory_space<vmem>>, %arg4: memref<3x128x128xbf16, #tpu.memory_space<vmem>>, %arg5: memref<3x128xf32, #tpu.memory_space<vmem>>, %arg6: memref<128x128xbf16, #tpu.memory_space<vmem>>, %arg7: memref<1x128xf32, #tpu.memory_space<vmem>>, %arg8: memref<32x128xf32, #tpu.memory_space<vmem>>) attributes {dimension_semantics = [#tpu.dimension_semantics<parallel>], iteration_bounds = array<i64: 2>, scalar_prefetch = 0 : i64, scratch_operands = 0 : i64, tpu.core_type = #tpu.core_type<tc>, window_params = [{transform_indices = @transform_0, window_bounds = array<i64: 32, 128>}, {pipeline_mode = #tpu.pipeline_mode<synchronous>, transform_indices = @transform_1, window_bounds = array<i64: 128, 128>}, {pipeline_mode = #tpu.pipeline_mode<synchronous>, transform_indices = @transform_2, window_bounds = array<i64: 1, 128>}, {pipeline_mode = #tpu.pipeline_mode<synchronous>, transform_indices = @transform_3, window_bounds = array<i64: 3, 128, 128>}, {pipeline_mode = #tpu.pipeline_mode<synchronous>, transform_indices = @transform_4, window_bounds = array<i64: 3, 128>}, {pipeline_mode = #tpu.pipeline_mode<synchronous>, transform_indices = @transform_5, window_bounds = array<i64: 128, 128>}, {pipeline_mode = #tpu.pipeline_mode<synchronous>, transform_indices = @transform_6, window_bounds = array<i64: 1, 128>}, {transform_indices = @transform_7, window_bounds = array<i64: 32, 128>}]} {
    %c0 = arith.constant 0 : index
    %c0_0 = arith.constant 0 : index
    %0 = vector.load %arg1[%c0, %c0_0] : memref<32x128xbf16, #tpu.memory_space<vmem>>, vector<32x128xbf16>
    %c0_1 = arith.constant 0 : index
    %c0_2 = arith.constant 0 : index
    %1 = vector.load %arg2[%c0_1, %c0_2] : memref<128x128xbf16, #tpu.memory_space<vmem>>, vector<128x128xbf16>
    %cst = arith.constant dense<0.000000e+00> : vector<32x128xf32>
    %2 = tpu.matmul %0, %1, %cst {dimension_numbers = #tpu.dot_dimension_numbers<[1], [0], [0], [1], [0, 0, 1, 1], [], []>} : vector<32x128xbf16>, vector<128x128xbf16>, vector<32x128xf32> -> vector<32x128xf32>
    %c0_3 = arith.constant 0 : index
    %c0_4 = arith.constant 0 : index
    %3 = vector.load %arg3[%c0_3, %c0_4] : memref<1x128xf32, #tpu.memory_space<vmem>>, vector<1x128xf32>
    %4 = vector.broadcast %3 : vector<1x128xf32> to vector<32x128xf32>
    %5 = arith.addf %2, %4 : vector<32x128xf32>
    %cst_5 = arith.constant 5.000000e-01 : f32
    %6 = vector.broadcast %cst_5 : f32 to vector<32x128xf32>
    %7 = arith.mulf %6, %5 : vector<32x128xf32>
    %cst_6 = arith.constant 0.707106769 : f32
    %8 = vector.broadcast %cst_6 : f32 to vector<32x128xf32>
    %9 = arith.mulf %5, %8 : vector<32x128xf32>
    %10 = math.erf %9 : vector<32x128xf32>
    %cst_7 = arith.constant 1.000000e+00 : f32
    %11 = vector.broadcast %cst_7 : f32 to vector<32x128xf32>
    %12 = arith.addf %11, %10 : vector<32x128xf32>
    %13 = arith.mulf %7, %12 : vector<32x128xf32>
    %14 = arith.truncf %13 : vector<32x128xf32> to vector<32x128xbf16>
    %c0_8 = arith.constant 0 : index
    %c0_9 = arith.constant 0 : index
    %c0_10 = arith.constant 0 : index
    %15 = vector.load %arg4[%c0_8, %c0_9, %c0_10] : memref<3x128x128xbf16, #tpu.memory_space<vmem>>, vector<1x128x128xbf16>
    %16 = vector.shape_cast %15 : vector<1x128x128xbf16> to vector<128x128xbf16>
    %cst_11 = arith.constant dense<0.000000e+00> : vector<32x128xf32>
    %17 = tpu.matmul %14, %16, %cst_11 {dimension_numbers = #tpu.dot_dimension_numbers<[1], [0], [0], [1], [0, 0, 1, 1], [], []>} : vector<32x128xbf16>, vector<128x128xbf16>, vector<32x128xf32> -> vector<32x128xf32>
    %c0_12 = arith.constant 0 : index
    %c0_13 = arith.constant 0 : index
    %18 = vector.load %arg5[%c0_12, %c0_13] : memref<3x128xf32, #tpu.memory_space<vmem>>, vector<1x128xf32>
    %19 = vector.broadcast %18 : vector<1x128xf32> to vector<32x128xf32>
    %20 = arith.addf %17, %19 : vector<32x128xf32>
    %cst_14 = arith.constant 5.000000e-01 : f32
    %21 = vector.broadcast %cst_14 : f32 to vector<32x128xf32>
    %22 = arith.mulf %21, %20 : vector<32x128xf32>
    %cst_15 = arith.constant 0.707106769 : f32
    %23 = vector.broadcast %cst_15 : f32 to vector<32x128xf32>
    %24 = arith.mulf %20, %23 : vector<32x128xf32>
    %25 = math.erf %24 : vector<32x128xf32>
    %cst_16 = arith.constant 1.000000e+00 : f32
    %26 = vector.broadcast %cst_16 : f32 to vector<32x128xf32>
    %27 = arith.addf %26, %25 : vector<32x128xf32>
    %28 = arith.mulf %22, %27 : vector<32x128xf32>
    %29 = arith.truncf %28 : vector<32x128xf32> to vector<32x128xbf16>
    %c1 = arith.constant 1 : index
    %c0_17 = arith.constant 0 : index
    %c0_18 = arith.constant 0 : index
    %30 = vector.load %arg4[%c1, %c0_17, %c0_18] : memref<3x128x128xbf16, #tpu.memory_space<vmem>>, vector<1x128x128xbf16>
    %31 = vector.shape_cast %30 : vector<1x128x128xbf16> to vector<128x128xbf16>
    %cst_19 = arith.constant dense<0.000000e+00> : vector<32x128xf32>
    %32 = tpu.matmul %29, %31, %cst_19 {dimension_numbers = #tpu.dot_dimension_numbers<[1], [0], [0], [1], [0, 0, 1, 1], [], []>} : vector<32x128xbf16>, vector<128x128xbf16>, vector<32x128xf32> -> vector<32x128xf32>
    %c1_20 = arith.constant 1 : index
    %c0_21 = arith.constant 0 : index
    %33 = vector.load %arg5[%c1_20, %c0_21] : memref<3x128xf32, #tpu.memory_space<vmem>>, vector<1x128xf32>
    %34 = vector.broadcast %33 : vector<1x128xf32> to vector<32x128xf32>
    %35 = arith.addf %32, %34 : vector<32x128xf32>
    %cst_22 = arith.constant 5.000000e-01 : f32
    %36 = vector.broadcast %cst_22 : f32 to vector<32x128xf32>
    %37 = arith.mulf %36, %35 : vector<32x128xf32>
    %cst_23 = arith.constant 0.707106769 : f32
    %38 = vector.broadcast %cst_23 : f32 to vector<32x128xf32>
    %39 = arith.mulf %35, %38 : vector<32x128xf32>
    %40 = math.erf %39 : vector<32x128xf32>
    %cst_24 = arith.constant 1.000000e+00 : f32
    %41 = vector.broadcast %cst_24 : f32 to vector<32x128xf32>
    %42 = arith.addf %41, %40 : vector<32x128xf32>
    %43 = arith.mulf %37, %42 : vector<32x128xf32>
    %44 = arith.truncf %43 : vector<32x128xf32> to vector<32x128xbf16>
    %c2 = arith.constant 2 : index
    %c0_25 = arith.constant 0 : index
    %c0_26 = arith.constant 0 : index
    %45 = vector.load %arg4[%c2, %c0_25, %c0_26] : memref<3x128x128xbf16, #tpu.memory_space<vmem>>, vector<1x128x128xbf16>
    %46 = vector.shape_cast %45 : vector<1x128x128xbf16> to vector<128x128xbf16>
    %cst_27 = arith.constant dense<0.000000e+00> : vector<32x128xf32>
    %47 = tpu.matmul %44, %46, %cst_27 {dimension_numbers = #tpu.dot_dimension_numbers<[1], [0], [0], [1], [0, 0, 1, 1], [], []>} : vector<32x128xbf16>, vector<128x128xbf16>, vector<32x128xf32> -> vector<32x128xf32>
    %c2_28 = arith.constant 2 : index
    %c0_29 = arith.constant 0 : index
    %48 = vector.load %arg5[%c2_28, %c0_29] : memref<3x128xf32, #tpu.memory_space<vmem>>, vector<1x128xf32>
    %49 = vector.broadcast %48 : vector<1x128xf32> to vector<32x128xf32>
    %50 = arith.addf %47, %49 : vector<32x128xf32>
    %cst_30 = arith.constant 5.000000e-01 : f32
    %51 = vector.broadcast %cst_30 : f32 to vector<32x128xf32>
    %52 = arith.mulf %51, %50 : vector<32x128xf32>
    %cst_31 = arith.constant 0.707106769 : f32
    %53 = vector.broadcast %cst_31 : f32 to vector<32x128xf32>
    %54 = arith.mulf %50, %53 : vector<32x128xf32>
    %55 = math.erf %54 : vector<32x128xf32>
    %cst_32 = arith.constant 1.000000e+00 : f32
    %56 = vector.broadcast %cst_32 : f32 to vector<32x128xf32>
    %57 = arith.addf %56, %55 : vector<32x128xf32>
    %58 = arith.mulf %52, %57 : vector<32x128xf32>
    %59 = arith.truncf %58 : vector<32x128xf32> to vector<32x128xbf16>
    %c0_33 = arith.constant 0 : index
    %c0_34 = arith.constant 0 : index
    %60 = vector.load %arg6[%c0_33, %c0_34] : memref<128x128xbf16, #tpu.memory_space<vmem>>, vector<128x128xbf16>
    %cst_35 = arith.constant dense<0.000000e+00> : vector<32x128xf32>
    %61 = tpu.matmul %59, %60, %cst_35 {dimension_numbers = #tpu.dot_dimension_numbers<[1], [0], [0], [1], [0, 0, 1, 1], [], []>} : vector<32x128xbf16>, vector<128x128xbf16>, vector<32x128xf32> -> vector<32x128xf32>
    %c0_36 = arith.constant 0 : index
    %c0_37 = arith.constant 0 : index
    %62 = vector.load %arg7[%c0_36, %c0_37] : memref<1x128xf32, #tpu.memory_space<vmem>>, vector<1x128xf32>
    %63 = vector.broadcast %62 : vector<1x128xf32> to vector<32x128xf32>
    %64 = arith.addf %61, %63 : vector<32x128xf32>
    %c0_38 = arith.constant 0 : index
    %c0_39 = arith.constant 0 : index
    %65 = vector.load %arg8[%c0_38, %c0_39] : memref<32x128xf32, #tpu.memory_space<vmem>>, vector<32x128xf32>
    tpu.vector_store %arg8[%c0_38, %c0_39], %64 {strides = array<i32>} : memref<32x128xf32, #tpu.memory_space<vmem>>, vector<32x128xf32>,
    return
  }
  func.func @transform_0(%arg0: i32) -> (i32, i32) {
    %c0_i32 = arith.constant 0 : i32
    %c0_i32_0 = arith.constant 0 : i32
    return %arg0, %c0_i32 : i32, i32
  }
  func.func @transform_1(%arg0: i32) -> (i32, i32) {
    %c0_i32 = arith.constant 0 : i32
    %c0_i32_0 = arith.constant 0 : i32
    %c0_i32_1 = arith.constant 0 : i32
    return %c0_i32, %c0_i32_0 : i32, i32
  }
  func.func @transform_2(%arg0: i32) -> (i32, i32) {
    %c0_i32 = arith.constant 0 : i32
    %c0_i32_0 = arith.constant 0 : i32
    %c0_i32_1 = arith.constant 0 : i32
    return %c0_i32, %c0_i32_0 : i32, i32
  }
  func.func @transform_3(%arg0: i32) -> (i32, i32, i32) {
    %c0_i32 = arith.constant 0 : i32
    %c0_i32_0 = arith.constant 0 : i32
    %c0_i32_1 = arith.constant 0 : i32
    %c0_i32_2 = arith.constant 0 : i32
    return %c0_i32, %c0_i32_0, %c0_i32_1 : i32, i32, i32
  }
  func.func @transform_4(%arg0: i32) -> (i32, i32) {
    %c0_i32 = arith.constant 0 : i32
    %c0_i32_0 = arith.constant 0 : i32
    %c0_i32_1 = arith.constant 0 : i32
    return %c0_i32, %c0_i32_0 : i32, i32
  }
  func.func @transform_5(%arg0: i32) -> (i32, i32) {
    %c0_i32 = arith.constant 0 : i32
    %c0_i32_0 = arith.constant 0 : i32
    %c0_i32_1 = arith.constant 0 : i32
    return %c0_i32, %c0_i32_0 : i32, i32
  }
  func.func @transform_6(%arg0: i32) -> (i32, i32) {
    %c0_i32 = arith.constant 0 : i32
    %c0_i32_0 = arith.constant 0 : i32
    %c0_i32_1 = arith.constant 0 : i32
    return %c0_i32, %c0_i32_0 : i32, i32
  }
  func.func @transform_7(%arg0: i32) -> (i32, i32) {
    %c0_i32 = arith.constant 0 : i32
    %c0_i32_0 = arith.constant 0 : i32
    return %arg0, %c0_i32 : i32, i32
  }
}

</mosaic_0001>

<bundles_post_ra>
// kernel: tpu_custom_call.1
= control target key start
LH: loop header
LB: loop body
LE: loop exit
PB: predicated region body
PF: predicated region fallthrough
CT: control target
= control target key end

     0   :  { %12 = vsyncpa [#allocation3], 0  ;;  %s2068_s0 = inlined_call_operand.hbm [shape: bf16[64,128], index: 0, kind: input, shape index: {}]   ;;  %s2069_s1 = inlined_call_operand.hbm [shape: bf16[128,128], index: 1, kind: input, shape index: {}]   ;;  %s2070_s2 = inlined_call_operand.vmem [shape: f32[1,128], index: 2, kind: input, shape index: {}]   ;;  %s2071_s3 = inlined_call_operand.hbm [shape: bf16[3,128,128], index: 3, kind: input, shape index: {}]   ;;  %s2072_s4 = inlined_call_operand.vmem [shape: f32[3,128], index: 4, kind: input, shape index: {}]   ;;  %s2073_s5 = inlined_call_operand.hbm [shape: bf16[128,128], index: 5, kind: input, shape index: {}]   ;;  %s2074_s6 = inlined_call_operand.vmem [shape: f32[1,128], index: 6, kind: input, shape index: {}]   ;;  %s2075_s7 = inlined_call_operand.hbm [shape: f32[64,128], index: 7, kind: output, shape index: {}]  }
   0x1   :  { %14 = vsyncpa [#allocation3 + $0x1], 0 }
   0x2   :  { %15 = vsyncpa [#allocation6], 0 }
   0x3   :  { %16 = vsyncpa [#allocation9], 0 }
   0x4   :  { %17 = vsyncpa [#allocation4], 0 }
   0x5   :  { %19 = vsyncpa [#allocation4 + $0x1], 0  ;;  %s1777_s24 = smov 0   ;;  %s1779_s25 = smov 0  }
   0x6   :  { %s1781_s26 = smov 0   ;;  %s1783_s27 = smov 0  }
   0x7 LB: > { %s1798_s28 = sadd.s32 4294967295, %s1726_s27   ;;  %s1164_s29 = sadd.s32 4294967294, %s1726_s27   ;;  %s1726_s27 = sphi %s1783_s27, %s2101_s27   ;;  %s1722_s26 = sphi %s1781_s26, %s2100_s26   ;;  %s1718_s25 = sphi %s1779_s25, %s2099_s25   ;;  %s1714_s24 = sphi %s1777_s24, %s2098_s24  }
   0x8   : > { %p45_p0 = scmp.ne.s32.totalorder %s1718_s25, %s1714_s24  ;;  %p2076_p1 = scmp.eq.s32.totalorder %s1798_s28, 0 }
   0x9   : > { %p201_p3 = scmp.eq.s32.totalorder %s1164_s29, 1  ;;  %p1165_p5 = scmp.ge.s32.totalorder %s1726_s27, 1 }
   0xa   : > { %p1807_p4 = por %p2076_p1, %p45_p0  ;;  %p208_p7 = scmp.lt.s32.totalorder %s1726_s27, 3 }
   0xb   : > { %p1812_p6 = por %p201_p3, %p45_p0  ;;  %s1728_s10 = smov [#allocation5]  }
   0xc   : > { %s2080_s30 = scalar_select %p1807_p4, 1, 0 }
   0xd   : > { %s2081_s8 = scalar_select %p1812_p6, 1, 0 }
   0xe   : > { %p1817_p8 = pnand %p1165_p5, %p208_p7  ;;  %s220_s11 = sshll.u32 %s1728_s10, 4  ;;  %s1821_s11 = int_to_ptr.vmem [resolvable:$true] %s220_s11 }
   0xf   : > { %2082 = sst [smem:[#allocation15_spill]] %s2081_s8  ;;  %s1729_s13 = smov [#allocation7]  }
  0x10   : > { %s2083_s9 = scalar_select %p1817_p8, 1, 0 }
  0x11   : > { %p1399_p9 = pneg %p1817_p8  ;;  %s236_s14 = sshll.u32 %s1729_s13, 4  ;;  %s1832_s14 = int_to_ptr.vmem [resolvable:$true] %s236_s14 }
  0x12   : > { %s1730_s15 = smov [#allocation8]   ;;  %s1538_s19 = scalar_lea.hbm %s2069_s1, 1024 }
  0x13   : > { %p1828_p11 = pnand %p1399_p9, %p2076_p1  ;;  %s1834_s16 = sshll.u32 %s1730_s15, 4  ;;  %s253_s16 = int_to_ptr.vmem [resolvable:$true] %s1834_s16 }
  0x14   : > { %p1539_p12 = scmp.ne.s32.totalorder %s2069_s1, %s1538_s19  ;;  %p1545_p5 = scmp.lt.u32.totalorder %s1538_s19, %s2069_s1 }
  0x15   : > { %p1844_p13 = pneg %p1828_p11 }
  0x17   : > { %p1541_p0 = pnand %p1844_p13, %p1539_p12 }
  0x19   : > { %p1542_p3 = pneg %p1541_p0 }
  0x1b   : > { %p1547_p7 = pnand %p1545_p5, %p1542_p3 }
  0x1d   : > { %1550 = shalt.err (!%p1547_p7)
}
  0x1e   : > { %s1551_s10 = scalar_lea.vmem %s1821_s11, 1024  ;;  %p1559_p2 = scmp.lt.s32.totalorder %s1821_s11, %s1821_s11 }
  0x1f   : > { %p1552_p9 = scmp.ne.s32.totalorder %s1821_s11, %s1551_s10  ;;  %p1560_p6 = scmp.lt.s32.totalorder %s1551_s10, %s1551_s10 }
  0x21   : > { %p1554_p10 = pnand %p1552_p9, %p1844_p13  ;;  %p1561_p12 = por %p1560_p6, %p1559_p2 }
  0x23   : > { %p1555_p1 = pneg %p1554_p10 }
  0x25   : > { %p1562_p0 = pnand %p1561_p12, %p1555_p1 }
  0x27   : > { %1565 = shalt.err (!%p1562_p0)
}
  0x28   : > { %s1731_s13 = smov 64   ;;  %s1732_s15 = smov 4  }
  0x29   : > { %1402 = dma.hbm_to_vmem [thread:$0]  (!%p1828_p11), %s2069_s1, 1024, %s1821_s11, [#allocation6], %s1731_s13, %s1731_s13, %s1732_s15  }
  0x2a   : > { %s1566_s21 = scalar_lea.hbm %s2071_s3, 3072 }
  0x2b   : > { %p1567_p1 = scmp.ne.s32.totalorder %s2071_s3, %s1566_s21  ;;  %p1573_p10 = scmp.lt.u32.totalorder %s1566_s21, %s2071_s3 }
  0x2d   : > { %p1569_p2 = pnand %p1567_p1, %p1844_p13 }
  0x2f   : > { %p1570_p6 = pneg %p1569_p2 }
  0x31   : > { %p1575_p3 = pnand %p1573_p10, %p1570_p6 }
  0x33   : > { %1578 = shalt.err (!%p1575_p3)
}
  0x34   : > { %s1579_s11 = scalar_lea.vmem %s1832_s14, 3072  ;;  %p1587_p12 = scmp.lt.s32.totalorder %s1832_s14, %s1832_s14 }
  0x35   : > { %p1580_p5 = scmp.ne.s32.totalorder %s1832_s14, %s1579_s11  ;;  %p1588_p0 = scmp.lt.s32.totalorder %s1579_s11, %s1579_s11 }
  0x37   : > { %p1582_p7 = pnand %p1580_p5, %p1844_p13  ;;  %p1589_p1 = por %p1588_p0, %p1587_p12 }
  0x39   : > { %p1583_p9 = pneg %p1582_p7 }
  0x3b   : > { %p1590_p2 = pnand %p1589_p1, %p1583_p9 }
  0x3d   : > { %1593 = shalt.err (!%p1590_p2)
}
  0x3e   : > { %1405 = dma.hbm_to_vmem [thread:$0]  (!%p1828_p11), %s2071_s3, 3072, %s1832_s14, [#allocation6], %s1731_s13, %s1731_s13, %s1732_s15  }
  0x3f   : > { %s1594_s20 = scalar_lea.hbm %s2073_s5, 1024 }
  0x40   : > { %p1595_p6 = scmp.ne.s32.totalorder %s2073_s5, %s1594_s20  ;;  %p1601_p5 = scmp.lt.u32.totalorder %s1594_s20, %s2073_s5 }
  0x42   : > { %p1597_p10 = pnand %p1595_p6, %p1844_p13 }
  0x44   : > { %p1598_p3 = pneg %p1597_p10 }
  0x46   : > { %p1603_p7 = pnand %p1601_p5, %p1598_p3 }
  0x48   : > { %1606 = shalt.err (!%p1603_p7)
}
  0x49   : > { %s1607_s11 = scalar_lea.vmem %s253_s16, 1024  ;;  %p1615_p1 = scmp.lt.s32.totalorder %s253_s16, %s253_s16 }
  0x4a   : > { %p1608_p9 = scmp.ne.s32.totalorder %s253_s16, %s1607_s11  ;;  %p1616_p2 = scmp.lt.s32.totalorder %s1607_s11, %s1607_s11 }
  0x4c   : > { %p1610_p12 = pnand %p1608_p9, %p1844_p13  ;;  %p1617_p4 = por %p1616_p2, %p1615_p1 }
  0x4e   : > { %p1611_p0 = pneg %p1610_p12 }
  0x50   : > { %p1618_p8 = pnand %p1617_p4, %p1611_p0 }
  0x52   : > { %1621 = shalt.err (!%p1618_p8)
}
  0x53   : > { %1408 = dma.hbm_to_vmem [thread:$0]  (!%p1828_p11), %s2073_s5, 1024, %s253_s16, [#allocation9], %s1731_s13, %s1731_s13, %s1732_s15  }
  0x54   : > { %s1917_s22 = sadd.s32 1, %s1726_s27   ;;  %s32_s17 = sadd.s32 1, %s1722_s26 }
  0x55   : > { %s29_s12 = ssub.s32 %s1726_s27, %s1917_s22  ;;  %p39_p8 = scmp.ne.s32.totalorder %s1722_s26, %s1718_s25 }
  0x56   : > { %p30_p4 = scmp.eq.s32.totalorder %s29_s12, 0  ;;  %p40_p13 = scmp.eq.s32.totalorder %s1726_s27, 0 }
  0x57   : > { %p1420_p6 = scmp.lt.s32.totalorder %s1726_s27, 2  ;;  %p2086_p3 = scmp.eq.s32.totalorder %s1798_s28, 1 }
  0x58   : > { %s1927_s18 = scalar_select %p30_p4, %s1722_s26, %s32_s17  }
  0x59   : > { %p41_p10 = por %p40_p13, %p39_p8  ;;  %p1931_p5 = por %p2086_p3, %p39_p8 }
  0x5a   : > { %s269_s20 = sand.u32 1, %s1722_s26   ;;  %s1231_s21 = sshll.u32 %s1726_s27, 8 }
  0x5b   : > { %s1170_s16 = sshll.u32 %s269_s20, 4  ;;  %s1940_s10 = scalar_lea.hbm %s2068_s0, %s1231_s21 }
  0x5c   : > { %s273_s11 = scalar_lea.vmem [#allocation2], %s1170_s16  ;;  %p1942_p11 = pnand %p1420_p6, %p41_p10 }
  0x5d   : > { %s280_s14 = sshll.u32 %s273_s11, 4  ;;  %s1948_s12 = scalar_lea.sflag [#allocation3], %s269_s20  ;;  %s1946_s14 = int_to_ptr.vmem [resolvable:$true] %s280_s14 }
  0x5e   : > { %s1622_s17 = scalar_lea.hbm %s1940_s10, 256  ;;  %p1624_p9 = pneg %p1942_p11 }
  0x5f   : > { %p1623_p7 = scmp.ne.s32.totalorder %s1940_s10, %s1622_s17  ;;  %s1627_s23 = scalar_lea.hbm %s2068_s0, 512 }
  0x60   : > { %p1628_p1 = scmp.lt.u32.totalorder %s1940_s10, %s2068_s0  ;;  %p1629_p2 = scmp.lt.u32.totalorder %s1627_s23, %s1622_s17 }
  0x61   : > { %p1625_p12 = pnand %p1624_p9, %p1623_p7  ;;  %p1631_p8 = scmp.lt.u32.totalorder %s1622_s17, %s1940_s10 }
  0x62   : > { %p1630_p4 = por %p1629_p2, %p1628_p1 }
  0x63   : > { %p1626_p0 = pneg %p1625_p12 }
  0x64   : > { %p1632_p13 = por %p1631_p8, %p1630_p4 }
  0x66   : > { %p1633_p6 = pnand %p1632_p13, %p1626_p0 }
  0x68   : > { %1636 = shalt.err (!%p1633_p6)
}
  0x69   : > { %s1637_s20 = scalar_lea.vmem %s1946_s14, 256  ;;  %s1733_s21 = smov [#allocation2]  }
  0x6a   : > { %p1638_p10 = scmp.ne.s32.totalorder %s1946_s14, %s1637_s20  ;;  %s1642_s16 = sshll.u32 %s1733_s21, 4  ;;  %s1643_s16 = int_to_ptr.vmem [resolvable:$false] %s1642_s16 }
  0x6b   : > { %s1644_s29 = scalar_lea.vmem %s1643_s16, 512  ;;  %p1645_p12 = scmp.lt.s32.totalorder %s1946_s14, %s1643_s16 }
  0x6c   : > { %p1640_p3 = pnand %p1638_p10, %p1624_p9  ;;  %p1646_p1 = scmp.lt.s32.totalorder %s1644_s29, %s1637_s20 }
  0x6e   : > { %p1641_p7 = pneg %p1640_p3  ;;  %p1647_p2 = por %p1646_p1, %p1645_p12 }
  0x70   : > { %p1648_p4 = pnand %p1647_p2, %p1641_p7 }
  0x72   : > { %1651 = shalt.err (!%p1648_p4)
}
  0x73   : > { %1412 = dma.hbm_to_vmem [thread:$0]  (!%p1942_p11), %s1940_s10, 256, %s1946_s14, %s1948_s12, %s1731_s13, %s1731_s13, %s1732_s15  }
  0x74   : > { %p2089_p9 = scmp.ne.s32.totalorder %s2083_s9, 0 }
  0x75   : > { %s1982_s17 = sand.u32 (!%p2089_p9), 1, %s1718_s25   ;;  %p2090_p0 = scmp.ne.s32.totalorder (!%p2089_p9), %s2080_s30, 0 }
  0x76   : > { %292 = sbr.rel (%p2089_p9) target bundleno = 1346 (0x542), region = 48  ;;  %s1174_s23 = sshll.u32 (!%p2089_p9), %s1982_s17, 4 }
  0x77   : > { %s295_s11 = scalar_lea.sflag (!%p2089_p9), [#allocation3], %s1982_s17  ;;  %s1986_s20 = scalar_lea.vmem (!%p2089_p9), [#allocation2], %s1174_s23 }
  0x7d   : > { %1697 = dma.done.wait (%p2090_p0), %s295_s11, 256  }
  0x7e   : > { %1699 = vsyncadd (%p2090_p0), %s295_s11, 4294967040  ;;  %p2091_p11 = scmp.eq.s32.totalorder %s1798_s28, 0 }
  0x80   : > { %1701 = dma.done.wait (%p2091_p11), [#allocation6], 4096   ;;  %p2092_p8 = pmov %p2091_p11 }
  0x82   : > { %1703 = vsyncadd (%p2092_p8), [#allocation6], 4294963200  ;;  %p2093_p13 = pmov %p2092_p8 }
  0x83   : > { %p2094_p6 = pmov %p2092_p8 }
  0x84   : > { %1705 = dma.done.wait (%p2093_p13), [#allocation9], 1024  }
  0x85   : > { %1707 = vsyncadd (%p2094_p6), [#allocation9], 4294966272  ;;  %v1464_v0 = vld [vmem:[#allocation5] sm:$0xff]   ;;  %v1465_v1 = vld [vmem:[#allocation5 + $0x8] sm:$0xff]   ;;  %s1178_s21 = sshll.u32 %s1982_s17, 5  ;;  %s1734_s10 = smov [#allocation10]  }
  0x86   : > { %1283 = vmatprep.subr.bf16.mxu0 %v1464_v0  ;;  %v1466_v2 = vld [vmem:[#allocation5 + $0x10] sm:$0xff]   ;;  %v1467_v3 = vld [vmem:[#allocation5 + $0x18] sm:$0xff]   ;;  %v1468_v5 = vld [vmem:[#allocation5 + $0x20] sm:$0xff]   ;;  %s340_s23 = scalar_lea.vmem [#allocation10], %s1178_s21  ;;  %s1656_s14 = sshll.u32 %s1734_s10, 4  ;;  %s1657_s14 = int_to_ptr.vmem [resolvable:$false] %s1656_s14 }
  0x87   : > { %1284 = vmatpush3.bf16.msra.mxu0 %v1464_v0  ;;  %v1472_v4 = vld [vmem:[%s1986_s20] sm:$0xff]   ;;  %v1475_v7 = vld [vmem:[#allocation7 + $0x8] sm:$0xff]   ;;  %v1471_v10 = vld [vmem:[#allocation5 + $0x38] sm:$0xff]   ;;  %s1062_s11 = sshll.u32 %s340_s23, 4  ;;  %s1658_s8 = scalar_lea.vmem %s1657_s14, 1024  ;;  %s2019_s11 = int_to_ptr.vmem [resolvable:$true] %s1062_s11 }
  0x88   : > { %1285 = vmatprep.subr.bf16.mxu0 %v1465_v1  ;;  %1299 = vmatprep.mubr.bf16.mxu0 %v1472_v4  ;;  %v1474_v6 = vld [vmem:[#allocation7] sm:$0xff]   ;;  %v1469_v8 = vld [vmem:[#allocation5 + $0x28] sm:$0xff]   ;;  %v1470_v9 = vld [vmem:[#allocation5 + $0x30] sm:$0xff]   ;;  %s1652_s15 = scalar_lea.vmem %s2019_s11, 512  ;;  %p1659_p12 = scmp.lt.s32.totalorder %s2019_s11, %s1657_s14 }
  0x89   : > { %1303 = vmatprep.subr.bf16.mxu1 %v1474_v6  ;;  %v1473_v11 = vld [vmem:[%s1986_s20 + $0x8] sm:$0xff]   ;;  %v1476_v12 = vld [vmem:[#allocation7 + $0x10] sm:$0xff]   ;;  %v1478_v14 = vld [vmem:[#allocation7 + $0x20] sm:$0xff]   ;;  %s1232_s20 = sshll.u32 %s1798_s28, 9  ;;  %s1049_s28 = scalar_lea.sflag [#allocation4], %s1982_s17 }
  0x8a   : > { %1304 = vmatpush3.bf16.msra.mxu1 %v1474_v6  ;;  %v1477_v13 = vld [vmem:[#allocation7 + $0x18] sm:$0xff]   ;;  %v1479_v15 = vld [vmem:[#allocation7 + $0x28] sm:$0xff]   ;;  %v1480_v16 = vld [vmem:[#allocation7 + $0x30] sm:$0xff]   ;;  %s2024_s13 = scalar_lea.hbm %s2075_s7, %s1232_s20  ;;  %p1653_p10 = scmp.ne.s32.totalorder %s2019_s11, %s1652_s15 }
  0x8b   : > { %1286 = vmatpush3.bf16.msra.mxu0 %v1465_v1  ;;  %1305 = vmatprep.subr.bf16.mxu1 %v1475_v7  ;;  %v1481_v17 = vld [vmem:[#allocation7 + $0x38] sm:$0xff]   ;;  %v1482_v18 = vld [vmem:[#allocation7 + $0x40] sm:$0xff]   ;;  %v1483_v19 = vld [vmem:[#allocation7 + $0x48] sm:$0xff]   ;;  %p1660_p1 = scmp.lt.s32.totalorder %s1658_s8, %s1652_s15 }
  0x8c   : > { %1287 = vmatprep.subr.bf16.mxu0 %v1466_v2  ;;  %v1179_v20 = vld [vmem:[%s2070_s2] ss:$0 sm:$0xff]  ;;  %v1484_v51 = vld [vmem:[#allocation7 + $0x50] sm:$0xff]   ;;  %v1485_v52 = vld [vmem:[#allocation7 + $0x58] sm:$0xff]   ;;  %p1654_p3 = pnand %p1653_p10, %p1931_p5 }
  0x8d   : > { %v1486_v53 = vld [vmem:[#allocation7 + $0x60] sm:$0xff]   ;;  %v1487_v54 = vld [vmem:[#allocation7 + $0x68] sm:$0xff]   ;;  %v1488_v55 = vld [vmem:[#allocation7 + $0x70] sm:$0xff]   ;;  %p1661_p2 = por %p1660_p1, %p1659_p12 }
  0x8e   : > { %1306 = vmatpush3.bf16.msra.mxu1 %v1475_v7  ;;  %v1489_v56 = vld [vmem:[#allocation7 + $0x78] sm:$0xff]   ;;  %v1490_v57 = vld [vmem:[#allocation7 + $0x80] sm:$0xff]   ;;  %v1491_v58 = vld [vmem:[#allocation7 + $0x88] sm:$0xff]   ;;  %p1655_p7 = pneg %p1654_p3 }
  0x8f   : > { %1288 = vmatpush3.bf16.msra.mxu0 %v1466_v2  ;;  %1307 = vmatprep.subr.bf16.mxu1 %v1476_v12  ;;  %v1190_v59 = vld [vmem:[%s2072_s4] ss:$0 sm:$0xff] }
  0x90   : > { %1289 = vmatprep.subr.bf16.mxu0 %v1467_v3  ;;  %p1662_p4 = pnand %p1661_p2, %p1655_p7 }
  0x92   : > { %1308 = vmatpush3.bf16.msra.mxu1 %v1476_v12 }
  0x93   : > { %1290 = vmatpush3.bf16.msra.mxu0 %v1467_v3  ;;  %1309 = vmatprep.subr.bf16.mxu1 %v1477_v13 }
  0x94   : > { %1291 = vmatprep.subr.bf16.mxu0 %v1468_v5 }
  0x96   : > { %1310 = vmatpush3.bf16.msra.mxu1 %v1477_v13 }
  0x97   : > { %1292 = vmatpush3.bf16.msra.mxu0 %v1468_v5  ;;  %1311 = vmatprep.subr.bf16.mxu1 %v1478_v14 }
  0x98   : > { %1293 = vmatprep.subr.bf16.mxu0 %v1469_v8 }
  0x9a   : > { %1312 = vmatpush3.bf16.msra.mxu1 %v1478_v14 }
  0x9b   : > { %1294 = vmatpush3.bf16.msra.mxu0 %v1469_v8  ;;  %1313 = vmatprep.subr.bf16.mxu1 %v1479_v15 }
  0x9c   : > { %1295 = vmatprep.subr.bf16.mxu0 %v1470_v9 }
  0x9e   : > { %1314 = vmatpush3.bf16.msra.mxu1 %v1479_v15 }
  0x9f   : > { %1296 = vmatpush3.bf16.msra.mxu0 %v1470_v9  ;;  %1315 = vmatprep.subr.bf16.mxu1 %v1480_v16 }
  0xa0   : > { %1297 = vmatprep.subr.bf16.mxu0 %v1471_v10 }
  0xa2   : > { %1316 = vmatpush3.bf16.msra.mxu1 %v1480_v16 }
  0xa3   : > { %1298 = vmatpush3.bf16.msra.mxu0 %v1471_v10  ;;  %1317 = vmatprep.subr.bf16.mxu1 %v1481_v17 }
  0xa4   : > { %1323 = vmatprep.subr.bf16.mxu0 %v1482_v18 }
  0xa6   : > { %1300 = vmatmul.mubr.bf16.vlgmr.msra.gmra.mrb[0].mxu0 %v1473_v11  ;;  %1318 = vmatpush3.bf16.msra.mxu1 %v1481_v17 }
  0xa7   : > { %1324 = vmatpush3.bf16.msra.mxu0 %v1482_v18  ;;  %1343 = vmatprep.subr.bf16.mxu1 %v1490_v57 }
  0xa8   : > { %1325 = vmatprep.subr.bf16.mxu0 %v1483_v19 }
  0xab   : > { %1326 = vmatpush3.bf16.msra.mxu0 %v1483_v19 }
  0xac   : > { %1327 = vmatprep.subr.bf16.mxu0 %v1484_v51 }
  0xaf   : > { %1328 = vmatpush3.bf16.msra.mxu0 %v1484_v51 }
  0xb0   : > { %1329 = vmatprep.subr.bf16.mxu0 %v1485_v52 }
  0xb3   : > { %1330 = vmatpush3.bf16.msra.mxu0 %v1485_v52 }
  0xb4   : > { %1331 = vmatprep.subr.bf16.mxu0 %v1486_v53 }
  0xb7   : > { %1332 = vmatpush3.bf16.msra.mxu0 %v1486_v53 }
  0xb8   : > { %1333 = vmatprep.subr.bf16.mxu0 %v1487_v54 }
  0xbb   : > { %1334 = vmatpush3.bf16.msra.mxu0 %v1487_v54 }
  0xbc   : > { %1335 = vmatprep.subr.bf16.mxu0 %v1488_v55 }
  0xbf   : > { %1336 = vmatpush3.bf16.msra.mxu0 %v1488_v55 }
  0xc0   : > { %1337 = vmatprep.subr.bf16.mxu0 %v1489_v56 }
  0xc3   : > { %1338 = vmatpush3.bf16.msra.mxu0 %v1489_v56 }
 0x179   : > { %v1301_v21 = vpop.f32.mrb[0].mxu0 }
 0x17a   : > { %v474_v22 = vadd.f32 %v1301_v21, %v1179_v20  ;;  %v465_v23 = vpop.f32.mrb[1].mxu0 }
 0x17b   : > { %v466_v24 = vadd.f32 %v1179_v20, %v465_v23  ;;  %v1302_v25 = vpop.f32.mrb[2].mxu0 }
 0x17c   : > { %v486_v26 = vmul.f32 0.70710677, %v474_v22  ;;  %v477_v27 = vadd.f32 %v1302_v25, %v1179_v20  ;;  %v468_v28 = vpop.f32.mrb[3].mxu0  ;;  %v482_v39 = vmul.f32 0.5, %v474_v22 }
 0x17d   : > { %v484_v29 = vmul.f32 0.70710677, %v466_v24  ;;  %v469_v30 = vadd.f32 %v1179_v20, %v468_v28  ;;  %v480_v42 = vmul.f32 0.5, %v466_v24  ;;  %v1494_v28 = vld [vmem:[#allocation7 + $0xa0] sm:$0xff]  }
 0x17e   : > { %1506 = verf.f32 %v486_v26  ;;  %v487_v31 = vmul.f32 0.70710677, %v477_v27  ;;  %v483_v40 = vmul.f32 0.5, %v477_v27  ;;  %v1492_v26 = vld [vmem:[#allocation7 + $0x90] sm:$0xff]   ;;  %v1493_v27 = vld [vmem:[#allocation7 + $0x98] sm:$0xff]  }
 0x17f   : > { %1508 = verf.f32 %v484_v29  ;;  %v485_v32 = vmul.f32 0.70710677, %v469_v30  ;;  %v481_v43 = vmul.f32 0.5, %v469_v30  ;;  %v1495_v29 = vld [vmem:[#allocation7 + $0xa8] sm:$0xff]   ;;  %v1496_v30 = vld [vmem:[#allocation7 + $0xb0] sm:$0xff]  }
 0x180   : > { %1510 = verf.f32 %v487_v31  ;;  %v1497_v31 = vld [vmem:[#allocation7 + $0xb8] sm:$0xff]  }
 0x181   : > { %1512 = verf.f32 %v485_v32  ;;  %v1498_v32 = vld [vmem:[#allocation8] sm:$0xff]  }
 0x182   : > { %1363 = vmatprep.subr.bf16.mxu0 %v1498_v32 }
 0x188   : > { %v1507_v33 = vpop.eup %1506 }
 0x189   : > { %v1509_v34 = vpop.eup %1508  ;;  %v494_v35 = vadd.f32 1.0, %v1507_v33  ;;  %v1499_v33 = vld [vmem:[#allocation8 + $0x8] sm:$0xff]  }
 0x18a   : > { %v1511_v36 = vpop.eup %1510  ;;  %v492_v37 = vadd.f32 1.0, %v1509_v34  ;;  %v1199_v34 = vld [vmem:[%s2072_s4 + $0x1] ss:$0 sm:$0xff] }
 0x18b   : > { %v1513_v38 = vpop.eup %1512  ;;  %v495_v41 = vadd.f32 1.0, %v1511_v36  ;;  %v498_v45 = vmul.f32 %v494_v35, %v482_v39 }
 0x18c   : > { %v493_v44 = vadd.f32 1.0, %v1513_v38  ;;  %v496_v47 = vmul.f32 %v492_v37, %v480_v42 }
 0x18d   : > { %v499_v46 = vmul.f32 %v495_v41, %v483_v40 }
 0x18e   : > { %v497_v48 = vmul.f32 %v493_v44, %v481_v43 }
 0x18f   : > { %v501_v49 = vpack.c.bf16 %v499_v46, %v498_v45 }
 0x190   : > { %v500_v50 = vpack.c.bf16 %v497_v48, %v496_v47 }
 0x192   : > { %1319 = vmatprep.mubr.bf16.mxu1 %v500_v50 }
 0x193   : > { %1320 = vmatmul.mubr.bf16.vlgmr.msra.gmra.mrb[0].mxu1 %v501_v49 }
 0x194   : > { %1344 = vmatpush3.bf16.msra.mxu1 %v1490_v57 }
 0x195   : > { %1345 = vmatprep.subr.bf16.mxu1 %v1491_v58 }
 0x198   : > { %1346 = vmatpush3.bf16.msra.mxu1 %v1491_v58 }
 0x199   : > { %1347 = vmatprep.subr.bf16.mxu1 %v1492_v26 }
 0x19c   : > { %1348 = vmatpush3.bf16.msra.mxu1 %v1492_v26 }
 0x19d   : > { %1349 = vmatprep.subr.bf16.mxu1 %v1493_v27 }
 0x1a0   : > { %1350 = vmatpush3.bf16.msra.mxu1 %v1493_v27 }
 0x1a1   : > { %1351 = vmatprep.subr.bf16.mxu1 %v1494_v28 }
 0x1a4   : > { %1352 = vmatpush3.bf16.msra.mxu1 %v1494_v28 }
 0x1a5   : > { %1353 = vmatprep.subr.bf16.mxu1 %v1495_v29 }
 0x1a8   : > { %1354 = vmatpush3.bf16.msra.mxu1 %v1495_v29 }
 0x1a9   : > { %1355 = vmatprep.subr.bf16.mxu1 %v1496_v30 }
 0x1ac   : > { %1356 = vmatpush3.bf16.msra.mxu1 %v1496_v30 }
 0x1ad   : > { %1357 = vmatprep.subr.bf16.mxu1 %v1497_v31 }
 0x1b0   : > { %1358 = vmatpush3.bf16.msra.mxu1 %v1497_v31 }
 0x266   : > { %v1321_v60 = vpop.f32.mrb[0].mxu1 }
 0x267   : > { %v614_v61 = vadd.f32 %v1321_v60, %v1190_v59  ;;  %v605_v62 = vpop.f32.mrb[1].mxu1 }
 0x268   : > { %v606_v63 = vadd.f32 %v1190_v59, %v605_v62  ;;  %v1322_v0 = vpop.f32.mrb[2].mxu1 }
 0x269   : > { %v626_v1 = vmul.f32 0.70710677, %v614_v61  ;;  %v617_v2 = vadd.f32 %v1322_v0, %v1190_v59  ;;  %v608_v3 = vpop.f32.mrb[3].mxu1  ;;  %v622_v14 = vmul.f32 0.5, %v614_v61 }
 0x26a   : > { %v624_v4 = vmul.f32 0.70710677, %v606_v63  ;;  %v609_v5 = vadd.f32 %v1190_v59, %v608_v3  ;;  %v620_v17 = vmul.f32 0.5, %v606_v63  ;;  %v1502_v3 = vld [vmem:[#allocation8 + $0x20] sm:$0xff]  }
 0x26b   : > { %1514 = verf.f32 %v626_v1  ;;  %v627_v6 = vmul.f32 0.70710677, %v617_v2  ;;  %v623_v15 = vmul.f32 0.5, %v617_v2  ;;  %v1500_v1 = vld [vmem:[#allocation8 + $0x10] sm:$0xff]   ;;  %v1501_v2 = vld [vmem:[#allocation8 + $0x18] sm:$0xff]  }
 0x26c   : > { %1516 = verf.f32 %v624_v4  ;;  %v625_v7 = vmul.f32 0.70710677, %v609_v5  ;;  %v621_v18 = vmul.f32 0.5, %v609_v5  ;;  %v1503_v4 = vld [vmem:[#allocation8 + $0x28] sm:$0xff]   ;;  %v1504_v5 = vld [vmem:[#allocation8 + $0x30] sm:$0xff]  }
 0x26d   : > { %1518 = verf.f32 %v627_v6  ;;  %v1505_v6 = vld [vmem:[#allocation8 + $0x38] sm:$0xff]  }
 0x26e   : > { %1520 = verf.f32 %v625_v7  ;;  %v1208_v7 = vld [vmem:[%s2072_s4 + $0x2] ss:$0 sm:$0xff] }
 0x275   : > { %v1515_v8 = vpop.eup %1514 }
 0x276   : > { %v1517_v9 = vpop.eup %1516  ;;  %v634_v10 = vadd.f32 1.0, %v1515_v8 }
 0x277   : > { %v1519_v11 = vpop.eup %1518  ;;  %v632_v12 = vadd.f32 1.0, %v1517_v9 }
 0x278   : > { %v1521_v13 = vpop.eup %1520  ;;  %v635_v16 = vadd.f32 1.0, %v1519_v11  ;;  %v638_v20 = vmul.f32 %v634_v10, %v622_v14 }
 0x279   : > { %v633_v19 = vadd.f32 1.0, %v1521_v13  ;;  %v636_v22 = vmul.f32 %v632_v12, %v620_v17 }
 0x27a   : > { %v639_v21 = vmul.f32 %v635_v16, %v623_v15 }
 0x27b   : > { %v637_v23 = vmul.f32 %v633_v19, %v621_v18 }
 0x27c   : > { %v641_v24 = vpack.c.bf16 %v639_v21, %v638_v20 }
 0x27d   : > { %v640_v25 = vpack.c.bf16 %v637_v23, %v636_v22 }
 0x27f   : > { %1339 = vmatprep.mubr.bf16.mxu0 %v640_v25 }
 0x280   : > { %1340 = vmatmul.mubr.bf16.vlgmr.msra.gmra.mrb[4].mxu0 %v641_v24 }
 0x281   : > { %1364 = vmatpush3.bf16.msra.mxu0 %v1498_v32 }
 0x282   : > { %1365 = vmatprep.subr.bf16.mxu0 %v1499_v33 }
 0x285   : > { %1366 = vmatpush3.bf16.msra.mxu0 %v1499_v33 }
 0x286   : > { %1367 = vmatprep.subr.bf16.mxu0 %v1500_v1 }
 0x289   : > { %1368 = vmatpush3.bf16.msra.mxu0 %v1500_v1 }
 0x28a   : > { %1369 = vmatprep.subr.bf16.mxu0 %v1501_v2 }
 0x28d   : > { %1370 = vmatpush3.bf16.msra.mxu0 %v1501_v2 }
 0x28e   : > { %1371 = vmatprep.subr.bf16.mxu0 %v1502_v3 }
 0x291   : > { %1372 = vmatpush3.bf16.msra.mxu0 %v1502_v3 }
 0x292   : > { %1373 = vmatprep.subr.bf16.mxu0 %v1503_v4 }
 0x295   : > { %1374 = vmatpush3.bf16.msra.mxu0 %v1503_v4 }
 0x296   : > { %1375 = vmatprep.subr.bf16.mxu0 %v1504_v5 }
 0x299   : > { %1376 = vmatpush3.bf16.msra.mxu0 %v1504_v5 }
 0x29a   : > { %1377 = vmatprep.subr.bf16.mxu0 %v1505_v6 }
 0x29d   : > { %1378 = vmatpush3.bf16.msra.mxu0 %v1505_v6 }
 0x353   : > { %v1341_v35 = vpop.f32.mrb[4].mxu0 }
 0x354   : > { %v755_v36 = vadd.f32 %v1341_v35, %v1199_v34  ;;  %v746_v37 = vpop.f32.mrb[5].mxu0 }
 0x355   : > { %v747_v38 = vadd.f32 %v1199_v34, %v746_v37  ;;  %v1342_v39 = vpop.f32.mrb[6].mxu0 }
 0x356   : > { %v767_v40 = vmul.f32 0.70710677, %v755_v36  ;;  %v758_v41 = vadd.f32 %v1342_v39, %v1199_v34  ;;  %v749_v42 = vpop.f32.mrb[7].mxu0  ;;  %v763_v53 = vmul.f32 0.5, %v755_v36 }
 0x357   : > { %v765_v43 = vmul.f32 0.70710677, %v747_v38  ;;  %v750_v44 = vadd.f32 %v1199_v34, %v749_v42  ;;  %v761_v56 = vmul.f32 0.5, %v747_v38  ;;  %v1217_v38 = vld [vmem:[%s2074_s6] ss:$0 sm:$0xff] }
 0x358   : > { %1522 = verf.f32 %v767_v40  ;;  %v768_v45 = vmul.f32 0.70710677, %v758_v41  ;;  %v764_v54 = vmul.f32 0.5, %v758_v41 }
 0x359   : > { %1524 = verf.f32 %v765_v43  ;;  %v766_v46 = vmul.f32 0.70710677, %v750_v44  ;;  %v762_v57 = vmul.f32 0.5, %v750_v44 }
 0x35a   : > { %1526 = verf.f32 %v768_v45 }
 0x35b   : > { %1528 = verf.f32 %v766_v46 }
 0x362   : > { %v1523_v47 = vpop.eup %1522 }
 0x363   : > { %v1525_v48 = vpop.eup %1524  ;;  %v775_v49 = vadd.f32 1.0, %v1523_v47 }
 0x364   : > { %v1527_v50 = vpop.eup %1526  ;;  %v773_v51 = vadd.f32 1.0, %v1525_v48 }
 0x365   : > { %v1529_v52 = vpop.eup %1528  ;;  %v776_v55 = vadd.f32 1.0, %v1527_v50  ;;  %v779_v59 = vmul.f32 %v775_v49, %v763_v53 }
 0x366   : > { %v774_v58 = vadd.f32 1.0, %v1529_v52  ;;  %v777_v61 = vmul.f32 %v773_v51, %v761_v56 }
 0x367   : > { %v780_v60 = vmul.f32 %v776_v55, %v764_v54 }
 0x368   : > { %v778_v62 = vmul.f32 %v774_v58, %v762_v57 }
 0x369   : > { %v782_v63 = vpack.c.bf16 %v780_v60, %v779_v59 }
 0x36a   : > { %v781_v0 = vpack.c.bf16 %v778_v62, %v777_v61 }
 0x36c   : > { %1359 = vmatprep.mubr.bf16.mxu1 %v781_v0 }
 0x36d   : > { %1360 = vmatmul.mubr.bf16.vlgmr.msra.gmra.mrb[4].mxu1 %v782_v63 }
 0x440   : > { %v1361_v8 = vpop.f32.mrb[4].mxu1 }
 0x441   : > { %v896_v9 = vadd.f32 %v1361_v8, %v1208_v7  ;;  %v887_v10 = vpop.f32.mrb[5].mxu1 }
 0x442   : > { %v888_v11 = vadd.f32 %v1208_v7, %v887_v10  ;;  %v1362_v12 = vpop.f32.mrb[6].mxu1 }
 0x443   : > { %v908_v13 = vmul.f32 0.70710677, %v896_v9  ;;  %v899_v14 = vadd.f32 %v1362_v12, %v1208_v7  ;;  %v890_v15 = vpop.f32.mrb[7].mxu1  ;;  %v904_v26 = vmul.f32 0.5, %v896_v9 }
 0x444   : > { %v906_v16 = vmul.f32 0.70710677, %v888_v11  ;;  %v891_v17 = vadd.f32 %v1208_v7, %v890_v15  ;;  %v902_v29 = vmul.f32 0.5, %v888_v11 }
 0x445   : > { %1530 = verf.f32 %v908_v13  ;;  %v909_v18 = vmul.f32 0.70710677, %v899_v14  ;;  %v905_v27 = vmul.f32 0.5, %v899_v14 }
 0x446   : > { %1532 = verf.f32 %v906_v16  ;;  %v907_v19 = vmul.f32 0.70710677, %v891_v17  ;;  %v903_v30 = vmul.f32 0.5, %v891_v17 }
 0x447   : > { %1534 = verf.f32 %v909_v18 }
 0x448   : > { %1536 = verf.f32 %v907_v19 }
 0x44f   : > { %v1531_v20 = vpop.eup %1530 }
 0x450   : > { %v1533_v21 = vpop.eup %1532  ;;  %v916_v22 = vadd.f32 1.0, %v1531_v20 }
 0x451   : > { %v1535_v23 = vpop.eup %1534  ;;  %v914_v24 = vadd.f32 1.0, %v1533_v21 }
 0x452   : > { %v1537_v25 = vpop.eup %1536  ;;  %v917_v28 = vadd.f32 1.0, %v1535_v23  ;;  %v920_v32 = vmul.f32 %v916_v22, %v904_v26 }
 0x453   : > { %v915_v31 = vadd.f32 1.0, %v1537_v25  ;;  %v918_v34 = vmul.f32 %v914_v24, %v902_v29 }
 0x454   : > { %v921_v33 = vmul.f32 %v917_v28, %v905_v27 }
 0x455   : > { %v919_v35 = vmul.f32 %v915_v31, %v903_v30 }
 0x456   : > { %v923_v36 = vpack.c.bf16 %v921_v33, %v920_v32 }
 0x457   : > { %v922_v37 = vpack.c.bf16 %v919_v35, %v918_v34 }
 0x459   : > { %1379 = vmatprep.mubr.bf16.mxu0 %v922_v37 }
 0x45a   : > { %1380 = vmatmul.mubr.bf16.vlgmr.msra.gmra.mrb[8].mxu0 %v923_v36 }
 0x52d   : > { %v1381_v39 = vpop.f32.mrb[8].mxu0 }
 0x52e   : > { %v1038_v40 = vadd.f32 %v1381_v39, %v1217_v38  ;;  %v1029_v41 = vpop.f32.mrb[9].mxu0 }
 0x52f   : > { %v1030_v42 = vadd.f32 %v1217_v38, %v1029_v41  ;;  %v1382_v43 = vpop.f32.mrb[10].mxu0 }
 0x530   : > { %1046 = vst [vmem:[%s340_s23 + $0x10] sm:$0xff] %v1038_v40  ;;  %v1041_v44 = vadd.f32 %v1382_v43, %v1217_v38  ;;  %v1032_v45 = vpop.f32.mrb[11].mxu0 }
 0x531   : > { %1044 = vst [vmem:[%s340_s23] sm:$0xff] %v1030_v42  ;;  %v1033_v46 = vadd.f32 %v1217_v38, %v1032_v45 }
 0x532   : > { %1047 = vst [vmem:[%s340_s23 + $0x18] sm:$0xff] %v1041_v44 }
 0x533   : > { %1045 = vst [vmem:[%s340_s23 + $0x8] sm:$0xff] %v1033_v46 }
 0x534   : > { %1665 = shalt.err (!%p1662_p4)
}
 0x535   : > { %s1666_s12 = scalar_lea.hbm %s2024_s13, 512  ;;  %s1670_s29 = scalar_lea.hbm %s2075_s7, 1024 }
 0x536   : > { %p1667_p9 = scmp.ne.s32.totalorder %s2024_s13, %s1666_s12  ;;  %p1671_p8 = scmp.lt.u32.totalorder %s2024_s13, %s2075_s7 }
 0x537   : > { %p1672_p13 = scmp.lt.u32.totalorder %s1670_s29, %s1666_s12  ;;  %p1674_p10 = scmp.lt.u32.totalorder %s1666_s12, %s2024_s13 }
 0x538   : > { %p1668_p0 = pnand %p1667_p9, %p1931_p5 }
 0x539   : > { %p1673_p6 = por %p1672_p13, %p1671_p8 }
 0x53a   : > { %p1669_p11 = pneg %p1668_p0 }
 0x53b   : > { %p1675_p3 = por %p1674_p10, %p1673_p6 }
 0x53d   : > { %p1676_p7 = pnand %p1675_p3, %p1669_p11 }
 0x53f   : > { %1679 = shalt.err (!%p1676_p7)
}
 0x540   : > { %s1735_s30 = smov 128   ;;  %s1736_s9 = smov 8  }
 0x541   : > { %1397 = dma.vmem_to_hbm [thread:$0]  (%p1931_p5), %s2019_s11, 512, %s2024_s13, %s1049_s28, %s1735_s30, %s1735_s30, %s1736_s9  }
 0x542 PF: > { %s2095_s15 = sld [smem:[#allocation15_spill]]  ;;  %s1077_s10 = sand.u32 1, %s1714_s24  }
 0x543   : > { %p2097_p1 = scmp.ge.s32.totalorder %s1726_s27, 2  ;;  %s1078_s14 = scalar_lea.sflag [#allocation4], %s1077_s10 }
 0x548   : > { %p2096_p12 = scmp.ne.s32.totalorder %s2095_s15, 0 }
 0x54a   : > { %p1414_p2 = pnand %p2097_p1, %p2096_p12 }
 0x54c   : > { %1709 = dma.done.wait (!%p1414_p2), %s1078_s14, 512  }
 0x54d   : > { %1711 = vsyncadd (!%p1414_p2), %s1078_s14, 4294966784  ;;  %p22_p4 = scmp.ge.s32.totalorder %s1917_s22, 4   ;;  %s2098_s24 = smov %s1718_s25 }
 0x54e   : > { %s2099_s25 = smov %s1722_s26  ;;  %s2100_s26 = smov %s1927_s18 }
 0x54f   : > { %s2101_s27 = smov %s1917_s22  ;;  %24 = sbr.rel (!%p22_p4) target bundleno = 7 (0x7), region = 107 }
 0x556   :  { %1083 = vsyncpa [#allocation3], 1 }
 0x557   :  { %1085 = vsyncpa [#allocation3 + $0x1], 1 }
 0x558   :  { %1086 = vsyncpa [#allocation6], 1 }
 0x559   :  { %1087 = vsyncpa [#allocation9], 1 }
 0x55a   :  { %1088 = vsyncpa [#allocation4], 1 }
 0x55b   :  { %1090 = vsyncpa [#allocation4 + $0x1], 1 }

</bundles_post_ra>
